<compile_context>
chip_gen: v5e
topology: v5e:2x2
jax: 0.10.0
libtpu: 0.0.40
codegen_flags: <defaults>
</compile_context>

<pallas_src>
import math
import functools

import jax
import jax.numpy as jnp
from jax.experimental import pallas as pl
from jax.experimental.pallas import tpu as pltpu


# ---------------------------------------------------------------------------
# Kernel
# ---------------------------------------------------------------------------
def attention_kernel(x_ref, wqkv_ref, bqkv_ref, wp_ref, bp_ref, o_ref,
                     attn_ref, *, n_heads):
    """One batch block of multi-head self-attention.

    x_ref    : (Bt, T, C)  compute dtype (bf16)
    wqkv_ref : (C, 3C)     compute dtype; [Wq*scale | Wk | Wv], pre-transposed
    bqkv_ref : (1, 3C)     f32; Q bias pre-scaled by 1/sqrt(D)
    wp_ref   : (C, C)      compute dtype; pre-transposed
    bp_ref   : (1, C)      f32
    o_ref    : (Bt, T, C)  output block
    attn_ref : (Bt*T, C)   bf16 VMEM scratch for the merged head outputs
    """
    Bt, T, C = x_ref.shape
    N = n_heads
    D = C // N

    # Flatten the batch block into rows -> large, lane-dense MXU matmuls.
    x2 = x_ref[...].reshape(Bt * T, C)

    # Q/K/V projections one C-wide column chunk at a time: only a single
    # (rows, C) f32 intermediate is live (the bias add + cast happen per
    # chunk), never a full (rows, 3C) f32 tensor plus its bf16 copy.
    def proj_chunk(i):
        w = wqkv_ref[:, i * C:(i + 1) * C]            # (C, C) compute dtype
        b = bqkv_ref[:, i * C:(i + 1) * C]            # (1, C) f32
        y = jnp.dot(x2, w, preferred_element_type=jnp.float32) + b
        return y.astype(x2.dtype)                     # bf16 for the MXU

    q16 = proj_chunk(0)   # 1/sqrt(D) already folded into Wq / bq (wrapper)
    k16 = proj_chunk(1)
    v16 = proj_chunk(2)

    # Per-head attention.  Heads are D-wide column groups; slicing them avoids
    # any reshape/transpose to head-major layout (no XLU relayouts).  The
    # Python loop is a static unroll over the small head count; each einsum
    # has a single leading batch dim, which lowers to a batched MXU matmul.
    for n in range(N):
        lo, hi = n * D, (n + 1) * D
        q_n = q16[:, lo:hi].reshape(Bt, T, D)
        k_n = k16[:, lo:hi].reshape(Bt, T, D)
        v_n = v16[:, lo:hi].reshape(Bt, T, D)

        # scores: (Bt, T, T) f32 (scale already folded into q).
        s = jnp.einsum('btd,bsd->bts', q_n, k_n,
                       preferred_element_type=jnp.float32)

        # numerically-stable softmax; EUP approx reciprocal for the normalize.
        m = jnp.max(s, axis=-1, keepdims=True)
        e = jnp.exp(s - m)
        denom = jnp.sum(e, axis=-1, keepdims=True)
        p = e * pl.reciprocal(denom, approx=True)

        # attention output for this head, written straight into the shared
        # bf16 scratch (replaces the old N-way f32 concatenate).
        o_n = jnp.einsum('bts,bsd->btd', p.astype(v_n.dtype), v_n,
                         preferred_element_type=jnp.float32)
        attn_ref[:, lo:hi] = o_n.reshape(Bt * T, D).astype(attn_ref.dtype)

    # Output projection (weight pre-transposed in wrapper). proj_drop=identity.
    out = jnp.dot(attn_ref[...], wp_ref[...],
                  preferred_element_type=jnp.float32) + bp_ref[...]
    o_ref[...] = out.reshape(Bt, T, C).astype(o_ref.dtype)


# ---------------------------------------------------------------------------
# VMEM-budget / generation-aware sizing
# ---------------------------------------------------------------------------
def _tpu_vmem_budget_and_min_steps():
    """Per-TensorCore VMEM budget (bytes) and minimum grid steps."""
    vmem_cap = 128 * 1024 * 1024
    try:
        vmem_cap = int(pltpu.get_tpu_info().vmem_capacity_bytes)
    except Exception:
        pass
    two_tc = False
    try:
        two_tc = "v7" in jax.devices()[0].device_kind.lower()
    except Exception:
        pass
    if two_tc:
        # v7x: 64 MiB per TensorCore, 2 TCs per chip.
        vmem_cap = min(vmem_cap, 64 * 1024 * 1024)
    budget = int(vmem_cap * 0.75)        # ~48 MiB on v7x, ~96 MiB on v5e/v6e
    min_grid_steps = 2 if two_tc else 1  # keep both v7x TensorCores busy
    return budget, min_grid_steps


def _estimate_vmem_bytes(block_b, T, C, n_heads,
                         in_itemsize=2, out_itemsize=4):
    """Rough peak-VMEM estimate for one grid step of the kernel above."""
    rows = block_b * T
    D = C // n_heads
    x_blocks   = 2 * rows * C * in_itemsize      # double-buffered input block
    out_blocks = 2 * rows * C * out_itemsize     # double-buffered output block
    weights    = (C * 3 * C * 2 + 3 * C * 4      # fused QKV w (bf16) + b (f32)
                  + C * C * 2 + C * 4)           # proj w (bf16) + b (f32)
    qkv_bf16   = 3 * rows * C * 2                # q16 / k16 / v16
    proj_f32   = rows * C * 4                    # transient f32 chunk
    scores_f32 = 2 * block_b * T * T * 4         # s + exp(s), one head live
    head_f32   = block_b * T * D * 4             # one head's f32 output
    attn_scr   = rows * C * 2                    # merged-heads bf16 scratch
    out_f32    = rows * C * 4                    # final f32 projection result
    return (x_blocks + out_blocks + weights + qkv_bf16 + proj_f32
            + scores_f32 + head_f32 + attn_scr + out_f32)


def _pick_block_b(B, T, C, n_heads, vmem_budget, min_grid_steps=1,
                  max_rows=4096):
    """Largest divisor of B whose per-step VMEM estimate fits the budget and
    leaves at least `min_grid_steps` grid steps (2 on v7x for its 2 TCs)."""
    min_steps = min(min_grid_steps, B)
    best = 1
    for d in range(1, B + 1):
        if B % d:
            continue
        if B // d < min_steps:
            continue
        if _estimate_vmem_bytes(d, T, C, n_heads) > vmem_budget:
            continue
        best = d
        if best * T >= max_rows:   # diminishing MXU-fill returns past this
            break
    return best


# ---------------------------------------------------------------------------
# pallas_call builder + wrapper
# ---------------------------------------------------------------------------
def _build_attention_call(B, T, C, n_heads, block_b, compute_dtype, out_dtype,
                          vmem_limit, single_buffer_weights):
    def const_spec(shape):
        idx = lambda b, _s=shape: (0,) * len(_s)
        if single_buffer_weights:
            # constant index_map -> double-buffering is pure VMEM waste.
            return pl.BlockSpec(shape, idx, pipeline_mode=pl.Buffered(1))
        return pl.BlockSpec(shape, idx)

    kernel = functools.partial(attention_kernel, n_heads=n_heads)
    grid = (B // block_b,)

    return pl.pallas_call(
        kernel,
        out_shape=jax.ShapeDtypeStruct((B, T, C), out_dtype),
        grid=grid,
        in_specs=[
            pl.BlockSpec((block_b, T, C), lambda b: (b, 0, 0)),   # x
            const_spec((C, 3 * C)),                               # fused QKV w
            const_spec((1, 3 * C)),                               # fused QKV b
            const_spec((C, C)),                                   # proj w
            const_spec((1, C)),                                   # proj b
        ],
        out_specs=pl.BlockSpec((block_b, T, C), lambda b: (b, 0, 0)),
        scratch_shapes=[pltpu.VMEM((block_b * T, C), compute_dtype)],
        compiler_params=pltpu.CompilerParams(
            dimension_semantics=("parallel",),
            vmem_limit_bytes=vmem_limit),
    )


def attention_forward(x, params, n_heads, *, block_b=None,
                      compute_dtype=jnp.bfloat16, out_dtype=None):
    B, T, C = x.shape
    assert C % n_heads == 0
    D = C // n_heads
    scale = 1.0 / math.sqrt(D)
    out_dtype = x.dtype if out_dtype is None else out_dtype  # bf16 output is
    # a valid option on v5e (halves HBM writeback) if the consumer accepts it.

    wq, bq, wk, bk, wv, bv, wp, bp = params

    # ---- wrapper-side packing (once per call, trivial vs. the matmuls) -----
    # Fused, pre-transposed QKV weight (C, 3C); Q part pre-scaled by 1/sqrt(D)
    # so the kernel never scales scores.  Biases stay f32 for exact adds.
    w_qkv = jnp.concatenate([wq * scale, wk, wv], axis=0).T.astype(compute_dtype)
    b_qkv = jnp.concatenate([bq * scale, bk, bv], axis=-1).astype(jnp.float32)
    w_proj = wp.T.astype(compute_dtype)            # (C, C)
    b_proj = bp.astype(jnp.float32)                # (1, C)
    x_in = x.astype(compute_dtype)

    vmem_budget, min_steps = _tpu_vmem_budget_and_min_steps()
    if block_b is None:
        block_b = _pick_block_b(B, T, C, n_heads, vmem_budget, min_steps)
    assert B % block_b == 0
    vmem_limit = int(min(vmem_budget, 100 * 1024 * 1024))

    args = (x_in, w_qkv, b_qkv, w_proj, b_proj)
    try:
        call = _build_attention_call(B, T, C, n_heads, block_b, compute_dtype,
                                     out_dtype, vmem_limit, True)
        return jax.block_until_ready(call(*args))
    except Exception:
        # Fallback for runtimes that reject single-buffered (Buffered(1)) specs.
        call = _build_attention_call(B, T, C, n_heads, block_b, compute_dtype,
                                     out_dtype, vmem_limit, False)
        return jax.block_until_ready(call(*args))


# ---------------------------------------------------------------------------
# Pure-JAX f32 reference mirroring the PyTorch forward exactly
# ---------------------------------------------------------------------------
def attention_reference(x, params, n_heads):
    wq, bq, wk, bk, wv, bv, wp, bp = params
    B, T, C = x.shape
    N, D = n_heads, C // n_heads

    def lin(a, w, b):
        return a @ w.T + b

    q = lin(x, wq, bq).reshape(B, T, N, D).transpose(0, 2, 1, 3)
    k = lin(x, wk, bk).reshape(B, T, N, D).transpose(0, 2, 1, 3)
    v = lin(x, wv, bv).reshape(B, T, N, D).transpose(0, 2, 1, 3)

    weights = jnp.einsum('bntd,bnsd->bnts', q, k) / math.sqrt(D)
    p = jax.nn.softmax(weights, axis=-1)
    attn = jnp.einsum('bnts,bnsd->bntd', p, v)
    attn = attn.transpose(0, 2, 1, 3).reshape(B, T, N * D)
    return lin(attn, wp, bp)


if __name__ == "__main__":
    # Small shapes consistent with the module's forward: x is (B, T, C).
    B, T, C = 2, 8, 32
    n_heads = 2
    # Note: at these toy sizes C < 128 so stores are lane-masked; at real
    # model sizes keep C a multiple of 128 for unmasked vst (v5e especially).

    key = jax.random.PRNGKey(0)
    keys = jax.random.split(key, 9)

    bound = 1.0 / math.sqrt(C)  # PyTorch Linear default init scale

    def make_linear(kw, kb):
        w = jax.random.uniform(kw, (C, C), jnp.float32, -bound, bound)
        b = jax.random.uniform(kb, (1, C), jnp.float32, -bound, bound)
        return w, b

    wq, bq = make_linear(keys[0], keys[1])
    wk, bk = make_linear(keys[2], keys[3])
    wv, bv = make_linear(keys[4], keys[5])
    wp, bp = make_linear(keys[6], keys[7])
    params = (wq, bq, wk, bk, wv, bv, wp, bp)

    x = jax.random.normal(keys[8], (B, T, C), jnp.float32)

    out = attention_forward(x, params, n_heads)
    out = jax.block_until_ready(out)

    ref = attention_reference(x, params, n_heads)
    assert out.shape == (B, T, C)
    # bf16 MXU operands + approx reciprocal -> looser tolerance than pure f32.
    assert jnp.allclose(out, ref, atol=2e-2, rtol=2e-2), \
        f"max abs err {jnp.max(jnp.abs(out - ref))}"

    print("KERNEL_OK")
</pallas_src>

<mosaic_0001>
module attributes {stable_mosaic.version = 11 : i64} {
  func.func @attention_kernel(%arg0: i32, %arg1: memref<2x8x32xbf16, #tpu.memory_space<vmem>>, %arg2: memref<32x96xbf16, #tpu.memory_space<vmem>>, %arg3: memref<1x96xf32, #tpu.memory_space<vmem>>, %arg4: memref<32x32xbf16, #tpu.memory_space<vmem>>, %arg5: memref<1x32xf32, #tpu.memory_space<vmem>>, %arg6: memref<2x8x32xf32, #tpu.memory_space<vmem>>, %arg7: memref<16x32xbf16, #tpu.memory_space<vmem>>) attributes {dimension_semantics = [#tpu.dimension_semantics<parallel>], iteration_bounds = array<i64: 1>, scalar_prefetch = 0 : i64, scratch_operands = 1 : i64, tpu.core_type = #tpu.core_type<tc>, window_params = [{transform_indices = @transform_0, window_bounds = array<i64: 2, 8, 32>}, {pipeline_mode = #tpu.pipeline_mode<synchronous>, transform_indices = @transform_1, window_bounds = array<i64: 32, 96>}, {pipeline_mode = #tpu.pipeline_mode<synchronous>, transform_indices = @transform_2, window_bounds = array<i64: 1, 96>}, {pipeline_mode = #tpu.pipeline_mode<synchronous>, transform_indices = @transform_3, window_bounds = array<i64: 32, 32>}, {pipeline_mode = #tpu.pipeline_mode<synchronous>, transform_indices = @transform_4, window_bounds = array<i64: 1, 32>}, {transform_indices = @transform_5, window_bounds = array<i64: 2, 8, 32>}]} {
    %c0 = arith.constant 0 : index
    %c0_0 = arith.constant 0 : index
    %c0_1 = arith.constant 0 : index
    %0 = vector.load %arg1[%c0, %c0_0, %c0_1] : memref<2x8x32xbf16, #tpu.memory_space<vmem>>, vector<2x8x32xbf16>
    %1 = vector.shape_cast %0 : vector<2x8x32xbf16> to vector<16x32xbf16>
    %c0_2 = arith.constant 0 : index
    %c0_3 = arith.constant 0 : index
    %2 = vector.load %arg2[%c0_2, %c0_3] : memref<32x96xbf16, #tpu.memory_space<vmem>>, vector<32x32xbf16>
    %c0_4 = arith.constant 0 : index
    %c0_5 = arith.constant 0 : index
    %3 = vector.load %arg3[%c0_4, %c0_5] : memref<1x96xf32, #tpu.memory_space<vmem>>, vector<1x32xf32>
    %cst = arith.constant dense<0.000000e+00> : vector<16x32xf32>
    %4 = tpu.matmul %1, %2, %cst {dimension_numbers = #tpu.dot_dimension_numbers<[1], [0], [0], [1], [0, 0, 1, 1], [], []>} : vector<16x32xbf16>, vector<32x32xbf16>, vector<16x32xf32> -> vector<16x32xf32>
    %5 = vector.broadcast %3 : vector<1x32xf32> to vector<16x32xf32>
    %6 = arith.addf %4, %5 : vector<16x32xf32>
    %7 = arith.truncf %6 : vector<16x32xf32> to vector<16x32xbf16>
    %c0_6 = arith.constant 0 : index
    %c32 = arith.constant 32 : index
    %8 = vector.load %arg2[%c0_6, %c32] : memref<32x96xbf16, #tpu.memory_space<vmem>>, vector<32x32xbf16>
    %c0_7 = arith.constant 0 : index
    %c32_8 = arith.constant 32 : index
    %9 = vector.load %arg3[%c0_7, %c32_8] : memref<1x96xf32, #tpu.memory_space<vmem>>, vector<1x32xf32>
    %cst_9 = arith.constant dense<0.000000e+00> : vector<16x32xf32>
    %10 = tpu.matmul %1, %8, %cst_9 {dimension_numbers = #tpu.dot_dimension_numbers<[1], [0], [0], [1], [0, 0, 1, 1], [], []>} : vector<16x32xbf16>, vector<32x32xbf16>, vector<16x32xf32> -> vector<16x32xf32>
    %11 = vector.broadcast %9 : vector<1x32xf32> to vector<16x32xf32>
    %12 = arith.addf %10, %11 : vector<16x32xf32>
    %13 = arith.truncf %12 : vector<16x32xf32> to vector<16x32xbf16>
    %c0_10 = arith.constant 0 : index
    %c64 = arith.constant 64 : index
    %14 = vector.load %arg2[%c0_10, %c64] : memref<32x96xbf16, #tpu.memory_space<vmem>>, vector<32x32xbf16>
    %c0_11 = arith.constant 0 : index
    %c64_12 = arith.constant 64 : index
    %15 = vector.load %arg3[%c0_11, %c64_12] : memref<1x96xf32, #tpu.memory_space<vmem>>, vector<1x32xf32>
    %cst_13 = arith.constant dense<0.000000e+00> : vector<16x32xf32>
    %16 = tpu.matmul %1, %14, %cst_13 {dimension_numbers = #tpu.dot_dimension_numbers<[1], [0], [0], [1], [0, 0, 1, 1], [], []>} : vector<16x32xbf16>, vector<32x32xbf16>, vector<16x32xf32> -> vector<16x32xf32>
    %17 = vector.broadcast %15 : vector<1x32xf32> to vector<16x32xf32>
    %18 = arith.addf %16, %17 : vector<16x32xf32>
    %19 = arith.truncf %18 : vector<16x32xf32> to vector<16x32xbf16>
    %20 = vector.extract_strided_slice %7 {offsets = [0, 0], sizes = [16, 16], strides = [1, 1]} : vector<16x32xbf16> to vector<16x16xbf16>
    %21 = vector.shape_cast %20 : vector<16x16xbf16> to vector<2x8x16xbf16>
    %22 = vector.extract_strided_slice %13 {offsets = [0, 0], sizes = [16, 16], strides = [1, 1]} : vector<16x32xbf16> to vector<16x16xbf16>
    %23 = vector.shape_cast %22 : vector<16x16xbf16> to vector<2x8x16xbf16>
    %24 = vector.extract_strided_slice %19 {offsets = [0, 0], sizes = [16, 16], strides = [1, 1]} : vector<16x32xbf16> to vector<16x16xbf16>
    %25 = vector.shape_cast %24 : vector<16x16xbf16> to vector<2x8x16xbf16>
    "tpu.trace_start"() <{level = 10 : i32, message = "btd,bsd->bts"}> : () -> ()
    %cst_14 = arith.constant dense<0.000000e+00> : vector<2x8x8xf32>
    %26 = tpu.matmul %21, %23, %cst_14 {dimension_numbers = #tpu.dot_dimension_numbers<[2], [2], [1], [1], [0, 0, 0, 1, 1, 1], [0], [0]>} : vector<2x8x16xbf16>, vector<2x8x16xbf16>, vector<2x8x8xf32> -> vector<2x8x8xf32>
    "tpu.trace_stop"() : () -> ()
    %cst_15 = arith.constant dense<0xFF800000> : vector<2x8xf32>
    %27 = vector.multi_reduction <maximumf>, %26, %cst_15 [2] : vector<2x8x8xf32> to vector<2x8xf32>
    %28 = vector.shape_cast %27 : vector<2x8xf32> to vector<2x8x1xf32>
    %29 = vector.broadcast %28 : vector<2x8x1xf32> to vector<2x8x8xf32>
    %30 = arith.subf %26, %29 : vector<2x8x8xf32>
    %31 = math.exp %30 : vector<2x8x8xf32>
    %cst_16 = arith.constant dense<0.000000e+00> : vector<2x8xf32>
    %32 = vector.multi_reduction <add>, %31, %cst_16 [2] : vector<2x8x8xf32> to vector<2x8xf32>
    %33 = vector.shape_cast %32 : vector<2x8xf32> to vector<2x8x1xf32>
    %34 = tpu.reciprocal %33 {approx = true} : vector<2x8x1xf32> -> vector<2x8x1xf32>
    %35 = vector.broadcast %34 : vector<2x8x1xf32> to vector<2x8x8xf32>
    %36 = arith.mulf %31, %35 : vector<2x8x8xf32>
    %37 = arith.truncf %36 : vector<2x8x8xf32> to vector<2x8x8xbf16>
    "tpu.trace_start"() <{level = 10 : i32, message = "bts,bsd->btd"}> : () -> ()
    %cst_17 = arith.constant dense<0.000000e+00> : vector<2x8x16xf32>
    %38 = tpu.matmul %37, %25, %cst_17 {dimension_numbers = #tpu.dot_dimension_numbers<[2], [1], [1], [2], [0, 0, 0, 1, 1, 2], [0], [0]>} : vector<2x8x8xbf16>, vector<2x8x16xbf16>, vector<2x8x16xf32> -> vector<2x8x16xf32>
    "tpu.trace_stop"() : () -> ()
    %39 = vector.shape_cast %38 : vector<2x8x16xf32> to vector<16x16xf32>
    %40 = arith.truncf %39 : vector<16x16xf32> to vector<16x16xbf16>
    %c0_18 = arith.constant 0 : index
    %c0_19 = arith.constant 0 : index
    %41 = vector.load %arg7[%c0_18, %c0_19] : memref<16x32xbf16, #tpu.memory_space<vmem>>, vector<16x16xbf16>
    tpu.vector_store %arg7[%c0_18, %c0_19], %40 {strides = array<i32>} : memref<16x32xbf16, #tpu.memory_space<vmem>>, vector<16x16xbf16>,
    %42 = vector.extract_strided_slice %7 {offsets = [0, 16], sizes = [16, 16], strides = [1, 1]} : vector<16x32xbf16> to vector<16x16xbf16>
    %43 = vector.shape_cast %42 : vector<16x16xbf16> to vector<2x8x16xbf16>
    %44 = vector.extract_strided_slice %13 {offsets = [0, 16], sizes = [16, 16], strides = [1, 1]} : vector<16x32xbf16> to vector<16x16xbf16>
    %45 = vector.shape_cast %44 : vector<16x16xbf16> to vector<2x8x16xbf16>
    %46 = vector.extract_strided_slice %19 {offsets = [0, 16], sizes = [16, 16], strides = [1, 1]} : vector<16x32xbf16> to vector<16x16xbf16>
    %47 = vector.shape_cast %46 : vector<16x16xbf16> to vector<2x8x16xbf16>
    "tpu.trace_start"() <{level = 10 : i32, message = "btd,bsd->bts"}> : () -> ()
    %cst_20 = arith.constant dense<0.000000e+00> : vector<2x8x8xf32>
    %48 = tpu.matmul %43, %45, %cst_20 {dimension_numbers = #tpu.dot_dimension_numbers<[2], [2], [1], [1], [0, 0, 0, 1, 1, 1], [0], [0]>} : vector<2x8x16xbf16>, vector<2x8x16xbf16>, vector<2x8x8xf32> -> vector<2x8x8xf32>
    "tpu.trace_stop"() : () -> ()
    %cst_21 = arith.constant dense<0xFF800000> : vector<2x8xf32>
    %49 = vector.multi_reduction <maximumf>, %48, %cst_21 [2] : vector<2x8x8xf32> to vector<2x8xf32>
    %50 = vector.shape_cast %49 : vector<2x8xf32> to vector<2x8x1xf32>
    %51 = vector.broadcast %50 : vector<2x8x1xf32> to vector<2x8x8xf32>
    %52 = arith.subf %48, %51 : vector<2x8x8xf32>
    %53 = math.exp %52 : vector<2x8x8xf32>
    %cst_22 = arith.constant dense<0.000000e+00> : vector<2x8xf32>
    %54 = vector.multi_reduction <add>, %53, %cst_22 [2] : vector<2x8x8xf32> to vector<2x8xf32>
    %55 = vector.shape_cast %54 : vector<2x8xf32> to vector<2x8x1xf32>
    %56 = tpu.reciprocal %55 {approx = true} : vector<2x8x1xf32> -> vector<2x8x1xf32>
    %57 = vector.broadcast %56 : vector<2x8x1xf32> to vector<2x8x8xf32>
    %58 = arith.mulf %53, %57 : vector<2x8x8xf32>
    %59 = arith.truncf %58 : vector<2x8x8xf32> to vector<2x8x8xbf16>
    "tpu.trace_start"() <{level = 10 : i32, message = "bts,bsd->btd"}> : () -> ()
    %cst_23 = arith.constant dense<0.000000e+00> : vector<2x8x16xf32>
    %60 = tpu.matmul %59, %47, %cst_23 {dimension_numbers = #tpu.dot_dimension_numbers<[2], [1], [1], [2], [0, 0, 0, 1, 1, 2], [0], [0]>} : vector<2x8x8xbf16>, vector<2x8x16xbf16>, vector<2x8x16xf32> -> vector<2x8x16xf32>
    "tpu.trace_stop"() : () -> ()
    %61 = vector.shape_cast %60 : vector<2x8x16xf32> to vector<16x16xf32>
    %62 = arith.truncf %61 : vector<16x16xf32> to vector<16x16xbf16>
    %c0_24 = arith.constant 0 : index
    %c16 = arith.constant 16 : index
    %63 = vector.load %arg7[%c0_24, %c16] : memref<16x32xbf16, #tpu.memory_space<vmem>>, vector<16x16xbf16>
    tpu.vector_store %arg7[%c0_24, %c16], %62 {strides = array<i32>} : memref<16x32xbf16, #tpu.memory_space<vmem>>, vector<16x16xbf16>,
    %c0_25 = arith.constant 0 : index
    %c0_26 = arith.constant 0 : index
    %64 = vector.load %arg7[%c0_25, %c0_26] : memref<16x32xbf16, #tpu.memory_space<vmem>>, vector<16x32xbf16>
    %c0_27 = arith.constant 0 : index
    %c0_28 = arith.constant 0 : index
    %65 = vector.load %arg4[%c0_27, %c0_28] : memref<32x32xbf16, #tpu.memory_space<vmem>>, vector<32x32xbf16>
    %cst_29 = arith.constant dense<0.000000e+00> : vector<16x32xf32>
    %66 = tpu.matmul %64, %65, %cst_29 {dimension_numbers = #tpu.dot_dimension_numbers<[1], [0], [0], [1], [0, 0, 1, 1], [], []>} : vector<16x32xbf16>, vector<32x32xbf16>, vector<16x32xf32> -> vector<16x32xf32>
    %c0_30 = arith.constant 0 : index
    %c0_31 = arith.constant 0 : index
    %67 = vector.load %arg5[%c0_30, %c0_31] : memref<1x32xf32, #tpu.memory_space<vmem>>, vector<1x32xf32>
    %68 = vector.broadcast %67 : vector<1x32xf32> to vector<16x32xf32>
    %69 = arith.addf %66, %68 : vector<16x32xf32>
    %70 = vector.shape_cast %69 : vector<16x32xf32> to vector<2x8x32xf32>
    %c0_32 = arith.constant 0 : index
    %c0_33 = arith.constant 0 : index
    %c0_34 = arith.constant 0 : index
    %71 = vector.load %arg6[%c0_32, %c0_33, %c0_34] : memref<2x8x32xf32, #tpu.memory_space<vmem>>, vector<2x8x32xf32>
    tpu.vector_store %arg6[%c0_32, %c0_33, %c0_34], %70 {strides = array<i32>} : memref<2x8x32xf32, #tpu.memory_space<vmem>>, vector<2x8x32xf32>,
    return
  }
  func.func @transform_0(%arg0: i32) -> (i32, i32, i32) {
    %c0_i32 = arith.constant 0 : i32
    %c0_i32_0 = arith.constant 0 : i32
    %c0_i32_1 = arith.constant 0 : i32
    return %arg0, %c0_i32, %c0_i32_0 : i32, i32, i32
  }
  func.func @transform_1(%arg0: i32) -> (i32, i32) {
    %c0_i32 = arith.constant 0 : i32
    %c0_i32_0 = arith.constant 0 : i32
    %c0_i32_1 = arith.constant 0 : i32
    return %c0_i32, %c0_i32_0 : i32, i32
  }
  func.func @transform_2(%arg0: i32) -> (i32, i32) {
    %c0_i32 = arith.constant 0 : i32
    %c0_i32_0 = arith.constant 0 : i32
    %c0_i32_1 = arith.constant 0 : i32
    return %c0_i32, %c0_i32_0 : i32, i32
  }
  func.func @transform_3(%arg0: i32) -> (i32, i32) {
    %c0_i32 = arith.constant 0 : i32
    %c0_i32_0 = arith.constant 0 : i32
    %c0_i32_1 = arith.constant 0 : i32
    return %c0_i32, %c0_i32_0 : i32, i32
  }
  func.func @transform_4(%arg0: i32) -> (i32, i32) {
    %c0_i32 = arith.constant 0 : i32
    %c0_i32_0 = arith.constant 0 : i32
    %c0_i32_1 = arith.constant 0 : i32
    return %c0_i32, %c0_i32_0 : i32, i32
  }
  func.func @transform_5(%arg0: i32) -> (i32, i32, i32) {
    %c0_i32 = arith.constant 0 : i32
    %c0_i32_0 = arith.constant 0 : i32
    %c0_i32_1 = arith.constant 0 : i32
    return %arg0, %c0_i32, %c0_i32_0 : i32, i32, i32
  }
}

module attributes {stable_mosaic.version = 11 : i64} {
  func.func @attention_kernel(%arg0: i32, %arg1: memref<2x8x32xbf16, #tpu.memory_space<vmem>>, %arg2: memref<32x96xbf16, #tpu.memory_space<vmem>>, %arg3: memref<1x96xf32, #tpu.memory_space<vmem>>, %arg4: memref<32x32xbf16, #tpu.memory_space<vmem>>, %arg5: memref<1x32xf32, #tpu.memory_space<vmem>>, %arg6: memref<2x8x32xf32, #tpu.memory_space<vmem>>, %arg7: memref<16x32xbf16, #tpu.memory_space<vmem>>) attributes {dimension_semantics = [#tpu.dimension_semantics<parallel>], iteration_bounds = array<i64: 1>, scalar_prefetch = 0 : i64, scratch_operands = 1 : i64, tpu.core_type = #tpu.core_type<tc>, window_params = [{transform_indices = @transform_0, window_bounds = array<i64: 2, 8, 32>}, {pipeline_mode = #tpu.pipeline_mode<synchronous>, transform_indices = @transform_1, window_bounds = array<i64: 32, 96>}, {pipeline_mode = #tpu.pipeline_mode<synchronous>, transform_indices = @transform_2, window_bounds = array<i64: 1, 96>}, {pipeline_mode = #tpu.pipeline_mode<synchronous>, transform_indices = @transform_3, window_bounds = array<i64: 32, 32>}, {pipeline_mode = #tpu.pipeline_mode<synchronous>, transform_indices = @transform_4, window_bounds = array<i64: 1, 32>}, {transform_indices = @transform_5, window_bounds = array<i64: 2, 8, 32>}]} {
    %c0 = arith.constant 0 : index
    %c0_0 = arith.constant 0 : index
    %c0_1 = arith.constant 0 : index
    %0 = vector.load %arg1[%c0, %c0_0, %c0_1] : memref<2x8x32xbf16, #tpu.memory_space<vmem>>, vector<2x8x32xbf16>
    %1 = vector.shape_cast %0 : vector<2x8x32xbf16> to vector<16x32xbf16>
    %c0_2 = arith.constant 0 : index
    %c0_3 = arith.constant 0 : index
    %2 = vector.load %arg2[%c0_2, %c0_3] : memref<32x96xbf16, #tpu.memory_space<vmem>>, vector<32x32xbf16>
    %c0_4 = arith.constant 0 : index
    %c0_5 = arith.constant 0 : index
    %3 = vector.load %arg3[%c0_4, %c0_5] : memref<1x96xf32, #tpu.memory_space<vmem>>, vector<1x32xf32>
    %cst = arith.constant dense<0.000000e+00> : vector<16x32xf32>
    %4 = tpu.matmul %1, %2, %cst {dimension_numbers = #tpu.dot_dimension_numbers<[1], [0], [0], [1], [0, 0, 1, 1], [], []>} : vector<16x32xbf16>, vector<32x32xbf16>, vector<16x32xf32> -> vector<16x32xf32>
    %5 = vector.broadcast %3 : vector<1x32xf32> to vector<16x32xf32>
    %6 = arith.addf %4, %5 : vector<16x32xf32>
    %7 = arith.truncf %6 : vector<16x32xf32> to vector<16x32xbf16>
    %c0_6 = arith.constant 0 : index
    %c32 = arith.constant 32 : index
    %8 = vector.load %arg2[%c0_6, %c32] : memref<32x96xbf16, #tpu.memory_space<vmem>>, vector<32x32xbf16>
    %c0_7 = arith.constant 0 : index
    %c32_8 = arith.constant 32 : index
    %9 = vector.load %arg3[%c0_7, %c32_8] : memref<1x96xf32, #tpu.memory_space<vmem>>, vector<1x32xf32>
    %cst_9 = arith.constant dense<0.000000e+00> : vector<16x32xf32>
    %10 = tpu.matmul %1, %8, %cst_9 {dimension_numbers = #tpu.dot_dimension_numbers<[1], [0], [0], [1], [0, 0, 1, 1], [], []>} : vector<16x32xbf16>, vector<32x32xbf16>, vector<16x32xf32> -> vector<16x32xf32>
    %11 = vector.broadcast %9 : vector<1x32xf32> to vector<16x32xf32>
    %12 = arith.addf %10, %11 : vector<16x32xf32>
    %13 = arith.truncf %12 : vector<16x32xf32> to vector<16x32xbf16>
    %c0_10 = arith.constant 0 : index
    %c64 = arith.constant 64 : index
    %14 = vector.load %arg2[%c0_10, %c64] : memref<32x96xbf16, #tpu.memory_space<vmem>>, vector<32x32xbf16>
    %c0_11 = arith.constant 0 : index
    %c64_12 = arith.constant 64 : index
    %15 = vector.load %arg3[%c0_11, %c64_12] : memref<1x96xf32, #tpu.memory_space<vmem>>, vector<1x32xf32>
    %cst_13 = arith.constant dense<0.000000e+00> : vector<16x32xf32>
    %16 = tpu.matmul %1, %14, %cst_13 {dimension_numbers = #tpu.dot_dimension_numbers<[1], [0], [0], [1], [0, 0, 1, 1], [], []>} : vector<16x32xbf16>, vector<32x32xbf16>, vector<16x32xf32> -> vector<16x32xf32>
    %17 = vector.broadcast %15 : vector<1x32xf32> to vector<16x32xf32>
    %18 = arith.addf %16, %17 : vector<16x32xf32>
    %19 = arith.truncf %18 : vector<16x32xf32> to vector<16x32xbf16>
    %20 = vector.extract_strided_slice %7 {offsets = [0, 0], sizes = [16, 16], strides = [1, 1]} : vector<16x32xbf16> to vector<16x16xbf16>
    %21 = vector.shape_cast %20 : vector<16x16xbf16> to vector<2x8x16xbf16>
    %22 = vector.extract_strided_slice %13 {offsets = [0, 0], sizes = [16, 16], strides = [1, 1]} : vector<16x32xbf16> to vector<16x16xbf16>
    %23 = vector.shape_cast %22 : vector<16x16xbf16> to vector<2x8x16xbf16>
    %24 = vector.extract_strided_slice %19 {offsets = [0, 0], sizes = [16, 16], strides = [1, 1]} : vector<16x32xbf16> to vector<16x16xbf16>
    %25 = vector.shape_cast %24 : vector<16x16xbf16> to vector<2x8x16xbf16>
    "tpu.trace_start"() <{level = 10 : i32, message = "btd,bsd->bts"}> : () -> ()
    %cst_14 = arith.constant dense<0.000000e+00> : vector<2x8x8xf32>
    %26 = tpu.matmul %21, %23, %cst_14 {dimension_numbers = #tpu.dot_dimension_numbers<[2], [2], [1], [1], [0, 0, 0, 1, 1, 1], [0], [0]>} : vector<2x8x16xbf16>, vector<2x8x16xbf16>, vector<2x8x8xf32> -> vector<2x8x8xf32>
    "tpu.trace_stop"() : () -> ()
    %cst_15 = arith.constant dense<0xFF800000> : vector<2x8xf32>
    %27 = vector.multi_reduction <maximumf>, %26, %cst_15 [2] : vector<2x8x8xf32> to vector<2x8xf32>
    %28 = vector.shape_cast %27 : vector<2x8xf32> to vector<2x8x1xf32>
    %29 = vector.broadcast %28 : vector<2x8x1xf32> to vector<2x8x8xf32>
    %30 = arith.subf %26, %29 : vector<2x8x8xf32>
    %31 = math.exp %30 : vector<2x8x8xf32>
    %cst_16 = arith.constant dense<0.000000e+00> : vector<2x8xf32>
    %32 = vector.multi_reduction <add>, %31, %cst_16 [2] : vector<2x8x8xf32> to vector<2x8xf32>
    %33 = vector.shape_cast %32 : vector<2x8xf32> to vector<2x8x1xf32>
    %34 = tpu.reciprocal %33 {approx = true} : vector<2x8x1xf32> -> vector<2x8x1xf32>
    %35 = vector.broadcast %34 : vector<2x8x1xf32> to vector<2x8x8xf32>
    %36 = arith.mulf %31, %35 : vector<2x8x8xf32>
    %37 = arith.truncf %36 : vector<2x8x8xf32> to vector<2x8x8xbf16>
    "tpu.trace_start"() <{level = 10 : i32, message = "bts,bsd->btd"}> : () -> ()
    %cst_17 = arith.constant dense<0.000000e+00> : vector<2x8x16xf32>
    %38 = tpu.matmul %37, %25, %cst_17 {dimension_numbers = #tpu.dot_dimension_numbers<[2], [1], [1], [2], [0, 0, 0, 1, 1, 2], [0], [0]>} : vector<2x8x8xbf16>, vector<2x8x16xbf16>, vector<2x8x16xf32> -> vector<2x8x16xf32>
    "tpu.trace_stop"() : () -> ()
    %39 = vector.shape_cast %38 : vector<2x8x16xf32> to vector<16x16xf32>
    %40 = arith.truncf %39 : vector<16x16xf32> to vector<16x16xbf16>
    %c0_18 = arith.constant 0 : index
    %c0_19 = arith.constant 0 : index
    %41 = vector.load %arg7[%c0_18, %c0_19] : memref<16x32xbf16, #tpu.memory_space<vmem>>, vector<16x16xbf16>
    tpu.vector_store %arg7[%c0_18, %c0_19], %40 {strides = array<i32>} : memref<16x32xbf16, #tpu.memory_space<vmem>>, vector<16x16xbf16>,
    %42 = vector.extract_strided_slice %7 {offsets = [0, 16], sizes = [16, 16], strides = [1, 1]} : vector<16x32xbf16> to vector<16x16xbf16>
    %43 = vector.shape_cast %42 : vector<16x16xbf16> to vector<2x8x16xbf16>
    %44 = vector.extract_strided_slice %13 {offsets = [0, 16], sizes = [16, 16], strides = [1, 1]} : vector<16x32xbf16> to vector<16x16xbf16>
    %45 = vector.shape_cast %44 : vector<16x16xbf16> to vector<2x8x16xbf16>
    %46 = vector.extract_strided_slice %19 {offsets = [0, 16], sizes = [16, 16], strides = [1, 1]} : vector<16x32xbf16> to vector<16x16xbf16>
    %47 = vector.shape_cast %46 : vector<16x16xbf16> to vector<2x8x16xbf16>
    "tpu.trace_start"() <{level = 10 : i32, message = "btd,bsd->bts"}> : () -> ()
    %cst_20 = arith.constant dense<0.000000e+00> : vector<2x8x8xf32>
    %48 = tpu.matmul %43, %45, %cst_20 {dimension_numbers = #tpu.dot_dimension_numbers<[2], [2], [1], [1], [0, 0, 0, 1, 1, 1], [0], [0]>} : vector<2x8x16xbf16>, vector<2x8x16xbf16>, vector<2x8x8xf32> -> vector<2x8x8xf32>
    "tpu.trace_stop"() : () -> ()
    %cst_21 = arith.constant dense<0xFF800000> : vector<2x8xf32>
    %49 = vector.multi_reduction <maximumf>, %48, %cst_21 [2] : vector<2x8x8xf32> to vector<2x8xf32>
    %50 = vector.shape_cast %49 : vector<2x8xf32> to vector<2x8x1xf32>
    %51 = vector.broadcast %50 : vector<2x8x1xf32> to vector<2x8x8xf32>
    %52 = arith.subf %48, %51 : vector<2x8x8xf32>
    %53 = math.exp %52 : vector<2x8x8xf32>
    %cst_22 = arith.constant dense<0.000000e+00> : vector<2x8xf32>
    %54 = vector.multi_reduction <add>, %53, %cst_22 [2] : vector<2x8x8xf32> to vector<2x8xf32>
    %55 = vector.shape_cast %54 : vector<2x8xf32> to vector<2x8x1xf32>
    %56 = tpu.reciprocal %55 {approx = true} : vector<2x8x1xf32> -> vector<2x8x1xf32>
    %57 = vector.broadcast %56 : vector<2x8x1xf32> to vector<2x8x8xf32>
    %58 = arith.mulf %53, %57 : vector<2x8x8xf32>
    %59 = arith.truncf %58 : vector<2x8x8xf32> to vector<2x8x8xbf16>
    "tpu.trace_start"() <{level = 10 : i32, message = "bts,bsd->btd"}> : () -> ()
    %cst_23 = arith.constant dense<0.000000e+00> : vector<2x8x16xf32>
    %60 = tpu.matmul %59, %47, %cst_23 {dimension_numbers = #tpu.dot_dimension_numbers<[2], [1], [1], [2], [0, 0, 0, 1, 1, 2], [0], [0]>} : vector<2x8x8xbf16>, vector<2x8x16xbf16>, vector<2x8x16xf32> -> vector<2x8x16xf32>
    "tpu.trace_stop"() : () -> ()
    %61 = vector.shape_cast %60 : vector<2x8x16xf32> to vector<16x16xf32>
    %62 = arith.truncf %61 : vector<16x16xf32> to vector<16x16xbf16>
    %c0_24 = arith.constant 0 : index
    %c16 = arith.constant 16 : index
    %63 = vector.load %arg7[%c0_24, %c16] : memref<16x32xbf16, #tpu.memory_space<vmem>>, vector<16x16xbf16>
    tpu.vector_store %arg7[%c0_24, %c16], %62 {strides = array<i32>} : memref<16x32xbf16, #tpu.memory_space<vmem>>, vector<16x16xbf16>,
    %c0_25 = arith.constant 0 : index
    %c0_26 = arith.constant 0 : index
    %64 = vector.load %arg7[%c0_25, %c0_26] : memref<16x32xbf16, #tpu.memory_space<vmem>>, vector<16x32xbf16>
    %c0_27 = arith.constant 0 : index
    %c0_28 = arith.constant 0 : index
    %65 = vector.load %arg4[%c0_27, %c0_28] : memref<32x32xbf16, #tpu.memory_space<vmem>>, vector<32x32xbf16>
    %cst_29 = arith.constant dense<0.000000e+00> : vector<16x32xf32>
    %66 = tpu.matmul %64, %65, %cst_29 {dimension_numbers = #tpu.dot_dimension_numbers<[1], [0], [0], [1], [0, 0, 1, 1], [], []>} : vector<16x32xbf16>, vector<32x32xbf16>, vector<16x32xf32> -> vector<16x32xf32>
    %c0_30 = arith.constant 0 : index
    %c0_31 = arith.constant 0 : index
    %67 = vector.load %arg5[%c0_30, %c0_31] : memref<1x32xf32, #tpu.memory_space<vmem>>, vector<1x32xf32>
    %68 = vector.broadcast %67 : vector<1x32xf32> to vector<16x32xf32>
    %69 = arith.addf %66, %68 : vector<16x32xf32>
    %70 = vector.shape_cast %69 : vector<16x32xf32> to vector<2x8x32xf32>
    %c0_32 = arith.constant 0 : index
    %c0_33 = arith.constant 0 : index
    %c0_34 = arith.constant 0 : index
    %71 = vector.load %arg6[%c0_32, %c0_33, %c0_34] : memref<2x8x32xf32, #tpu.memory_space<vmem>>, vector<2x8x32xf32>
    tpu.vector_store %arg6[%c0_32, %c0_33, %c0_34], %70 {strides = array<i32>} : memref<2x8x32xf32, #tpu.memory_space<vmem>>, vector<2x8x32xf32>,
    return
  }
  func.func @transform_0(%arg0: i32) -> (i32, i32, i32) {
    %c0_i32 = arith.constant 0 : i32
    %c0_i32_0 = arith.constant 0 : i32
    %c0_i32_1 = arith.constant 0 : i32
    return %arg0, %c0_i32, %c0_i32_0 : i32, i32, i32
  }
  func.func @transform_1(%arg0: i32) -> (i32, i32) {
    %c0_i32 = arith.constant 0 : i32
    %c0_i32_0 = arith.constant 0 : i32
    %c0_i32_1 = arith.constant 0 : i32
    return %c0_i32, %c0_i32_0 : i32, i32
  }
  func.func @transform_2(%arg0: i32) -> (i32, i32) {
    %c0_i32 = arith.constant 0 : i32
    %c0_i32_0 = arith.constant 0 : i32
    %c0_i32_1 = arith.constant 0 : i32
    return %c0_i32, %c0_i32_0 : i32, i32
  }
  func.func @transform_3(%arg0: i32) -> (i32, i32) {
    %c0_i32 = arith.constant 0 : i32
    %c0_i32_0 = arith.constant 0 : i32
    %c0_i32_1 = arith.constant 0 : i32
    return %c0_i32, %c0_i32_0 : i32, i32
  }
  func.func @transform_4(%arg0: i32) -> (i32, i32) {
    %c0_i32 = arith.constant 0 : i32
    %c0_i32_0 = arith.constant 0 : i32
    %c0_i32_1 = arith.constant 0 : i32
    return %c0_i32, %c0_i32_0 : i32, i32
  }
  func.func @transform_5(%arg0: i32) -> (i32, i32, i32) {
    %c0_i32 = arith.constant 0 : i32
    %c0_i32_0 = arith.constant 0 : i32
    %c0_i32_1 = arith.constant 0 : i32
    return %arg0, %c0_i32, %c0_i32_0 : i32, i32, i32
  }
}

</mosaic_0001>

<bundles_post_ra>
// kernel: tpu_custom_call.1
= control target key start
LH: loop header
LB: loop body
LE: loop exit
PB: predicated region body
PF: predicated region fallthrough
CT: control target
= control target key end

     0   :  { %10 = vsyncpa [#allocation4], 0  ;;  %s766_s0 = inlined_call_operand.hbm [shape: bf16[2,8,32], index: 0, kind: input, shape index: {}]   ;;  %s767_s1 = inlined_call_operand.hbm [shape: bf16[32,96], index: 1, kind: input, shape index: {}]   ;;  %s768_s2 = inlined_call_operand.vmem [shape: f32[1,96], index: 2, kind: input, shape index: {}]   ;;  %s769_s3 = inlined_call_operand.hbm [shape: bf16[32,32], index: 3, kind: input, shape index: {}]   ;;  %s770_s4 = inlined_call_operand.vmem [shape: f32[1,32], index: 4, kind: input, shape index: {}]   ;;  %s771_s5 = inlined_call_operand.hbm [shape: f32[2,8,32], index: 5, kind: output, shape index: {}]  }
   0x1   :  { %11 = vsyncpa [#allocation7], 0 }
   0x2   :  { %12 = vsyncpa [#allocation5], 0  ;;  %s30_s20 = sshll.u32 %s767_s1, 4  ;;  %s656_s21 = smov [#allocation6]   ;;  %s31_s20 = int_to_ptr.hbm [resolvable:$true] %s30_s20 }
   0x3   :  { %s32_s22 = sshll.u32 %s656_s21, 4  ;;  %s17_s25 = sshll.u32 %s766_s0, 4  ;;  %s33_s22 = int_to_ptr.vmem [resolvable:$true] %s32_s22  ;;  %s18_s25 = int_to_ptr.hbm [resolvable:$true] %s17_s25 }
   0x4   :  { %s657_s26 = smov 64   ;;  %s658_s27 = smov 4  }
   0x5   :  { %38 = dma.hbm_to_vmem [thread:$0]  %s31_s20, 256, %s33_s22, [#allocation7], %s657_s26, %s657_s26, %s658_s27  }
   0x6   :  { %s659_s28 = smov [#allocation3]   ;;  %s45_s1 = sshll.u32 %s769_s3, 4  ;;  %s46_s1 = int_to_ptr.hbm [resolvable:$true] %s45_s1 }
   0x7   :  { %s19_s29 = sshll.u32 %s659_s28, 4  ;;  %s660_s7 = smov [#allocation8]   ;;  %s20_s29 = int_to_ptr.vmem [resolvable:$true] %s19_s29 }
   0x8   :  { %25 = dma.hbm_to_vmem [thread:$0]  %s18_s25, 128, %s20_s29, [#allocation4], %s657_s26, %s657_s26, %s658_s27  }
   0x9   :  { %s47_s8 = sshll.u32 %s660_s7, 4  ;;  %s48_s8 = int_to_ptr.vmem [resolvable:$true] %s47_s8 }
   0xa   :  { %53 = dma.hbm_to_vmem [thread:$0]  %s46_s1, 256, %s48_s8, [#allocation7], %s657_s26, %s657_s26, %s658_s27  }
   0xb   :  { %650 = dma.done.wait [#allocation4], 128  }
   0xc   :  { %651 = vsyncadd [#allocation4], 4294967168 }
   0xd   :  { %652 = dma.done.wait [#allocation7], 512  }
   0xe   :  { %653 = vsyncadd [#allocation7], 4294966784  ;;  %v521_v0 = vld [vmem:[#allocation6 + $0x8] sm:$0xff]  ;;  %s661_s0 = smov 96   ;;  %v520_v1 = vld [vmem:[#allocation6] sm:$0xff]  ;;  %vm96_vm0 = vcmask 261120  }
   0xf   :  { %118 = vrot.lane.b32.xlu0 %v521_v0, %s661_s0  ;;  %106 = vmatpush.bf16.msra.mxu0 %v521_v0  ;;  %v519_v2 = vld [vmem:[#allocation3] sm:$0xff]  ;;  %v716_v3 = vld [vmem:[%s768_s2] ss:$0 sm:$0xff]  ;;  %s662_s10 = smov 112   ;;  %vm166_vm1 = vcmask 130048   ;;  %vm205_vm2 = vcmask 64512  }
  0x10   :  { %122 = vrot.lane.b32.xlu1 %v716_v3, %s661_s0  ;;  %vm233_vm3 = vcmask 1043456   ;;  %vm271_vm4 = vcmask 125952   ;;  %s663_s2 = smov 16   ;;  %vm414_vm5 = vcmask 257152   ;;  %s664_s13 = smov [#allocation9]  }
  0x11   :  { %s467_s14 = sshll.u32 %s664_s13, 4  ;;  %s469_s17 = sshll.u32 %s771_s5, 4  ;;  %s468_s14 = int_to_ptr.vmem [resolvable:$true] %s467_s14  ;;  %s470_s17 = int_to_ptr.hbm [resolvable:$true] %s469_s17 }
  0x12   :  { %s665_s18 = smov 128   ;;  %s666_s19 = smov 8  }
  0x13   :  { %107 = vmatpush.bf16.msra.mxu0 %v520_v1 }
  0x16   :  { %495 = vmatmul.msk.bf16.vlgmr.msra.gmra.mxu0 %vm96_vm0, %v519_v2 }
  0x17   :  { %116 = vrot.lane.b32.xlu0 %v520_v1, %s661_s0 }
  0x81   :  { %v119_v4 = vpop.permute.xlu0 %118 }
  0x82   :  { %131 = vmatpush.bf16.msra.mxu1 %v119_v4  ;;  %v123_v12 = vpop.permute.xlu1 %122 }
  0x89   :  { %v117_v5 = vpop.permute.xlu0 %116 }
  0x8a   :  { %132 = vmatpush.bf16.msra.mxu1 %v117_v5 }
  0x8d   :  { %496 = vmatmul.msk.bf16.vlgmr.msra.gmra.mxu1 %vm96_vm0, %v519_v2 }
  0x93   :  { %v109_v6 = vpop.f32.mrf.mxu0 }
  0x94   :  { %v110_v18 = vadd.f32 %v716_v3, %v109_v6 }
  0x96   :  { %v114_v22 = vpack.c.bf16 %v110_v18, %v110_v18 }
  0x98   :  { %v275_v27 = vunpack.c.l.b16 %v114_v22 }
  0x9a   :  { %v276_v28 = vpack.c.b16 %v275_v27, %v275_v27 }
  0x9b   :  { %v111_v7 = vpop.f32.mrf.mxu0 }
  0x9c   :  { %v112_v8 = vadd.f32 %v716_v3, %v111_v7 }
  0x9e   :  { %v115_v9 = vpack.c.bf16 %v112_v8, %v112_v8 }
  0xa0   :  { %v304_v10 = vunpack.c.l.b16 %v115_v9 }
  0xa2   :  { %v305_v11 = vpack.c.b16 %v304_v10, %v304_v10 }
  0xa4   :  { %306 = vrot.lane.b32.xlu0 %v305_v11, %s662_s10 }
 0x10a   :  { %v134_v13 = vpop.f32.mrf.mxu1 }
 0x10b   :  { %v135_v14 = vadd.f32 %v134_v13, %v123_v12 }
 0x10d   :  { %v139_v15 = vpack.c.bf16 %v135_v14, %v135_v14 }
 0x10f   :  { %v280_v16 = vunpack.c.l.b16 %v139_v15  ;;  %v171_v17 = vsel %vm166_vm1, %v139_v15, 0 }
 0x110   :  { %180 = vmatpush.bf16.xpose.msra.mxu3 %v171_v17 }
 0x111   :  { %v281_v19 = vpack.c.b16 %v280_v16, %v280_v16 }
 0x112   :  { %v136_v20 = vpop.f32.mrf.mxu1 }
 0x113   :  { %v137_v21 = vadd.f32 %v136_v20, %v123_v12  ;;  %282 = vrot.lane.b32.xlu1 %v281_v19, %s662_s10 }
 0x115   :  { %v140_v23 = vpack.c.bf16 %v137_v21, %v137_v21 }
 0x116   :  { %v307_v31 = vpop.permute.xlu0 %306 }
 0x117   :  { %498 = vmatmul.msk.bf16.vlgmr.msra.gmra.mxu3 %vm166_vm1, %v114_v22  ;;  %v190_v24 = vsel %vm166_vm1, %v140_v23, 0  ;;  %v309_v25 = vunpack.c.l.b16 %v140_v23 }
 0x118   :  { %199 = vmatpush.bf16.xpose.msrb.mxu0 %v190_v24 }
 0x119   :  { %v310_v26 = vpack.c.b16 %v309_v25, %v309_v25 }
 0x11b   :  { %311 = vrot.lane.b32.xlu2 %v310_v26, %s662_s10  ;;  %143 = vrot.lane.b32.xlu1 %v521_v0, %s657_s26 }
 0x11f   :  { %499 = vmatmul.msk.bf16.vlgmr.msrb.gmra.mxu0 %vm166_vm1, %v115_v9 }
 0x123   :  { %277 = vrot.lane.b32.xlu2 %v276_v28, %s662_s10 }
 0x12b   :  { %141 = vrot.lane.b32.xlu2 %v520_v1, %s657_s26 }
 0x175   :  { %v312_v29 = vpop.permute.xlu2 %311 }
 0x176   :  { %v317_v30 = vsel %vm166_vm1, %v312_v29, 0 }
 0x177   :  { %326 = vmatpush.bf16.xpose.msra.mxu0 %v317_v30 }
 0x17d   :  { %v278_v34 = vpop.permute.xlu2 %277 }
 0x17e   :  { %503 = vmatmul.msk.bf16.vlgmr.msra.gmra.mxu0 %vm166_vm1, %v307_v31 }
 0x185   :  { %v283_v32 = vpop.permute.xlu1 %282  ;;  %v142_v36 = vpop.permute.xlu2 %141 }
 0x186   :  { %v288_v33 = vsel %vm166_vm1, %v283_v32, 0 }
 0x187   :  { %297 = vmatpush.bf16.xpose.msrb.mxu3 %v288_v33 }
 0x18d   :  { %v144_v35 = vpop.permute.xlu1 %143 }
 0x18e   :  { %502 = vmatmul.msk.bf16.vlgmr.msrb.gmra.mxu3 %vm166_vm1, %v278_v34  ;;  %156 = vmatpush.bf16.msra.mxu2 %v144_v35 }
 0x192   :  { %157 = vmatpush.bf16.msra.mxu2 %v142_v36 }
 0x195   :  { %497 = vmatmul.msk.bf16.vlgmr.msra.gmra.mxu2 %vm96_vm0, %v519_v2 }
 0x19a   :  { %v182_v37 = vpop.f32.mrf.mxu3 }
 0x19b   :  { %v206_v38 = vsel %vm205_vm2, %v182_v37, -inf }
 0x19c   :  { %v201_v39 = vpop.f32.mrf.mxu0  ;;  %207 = vmax.xlane.f32.xlu1 %v206_v38 }
 0x19d   :  { %v209_v40 = vsel %vm205_vm2, %v201_v39, -inf }
 0x19e   :  { %210 = vmax.xlane.f32.xlu0 %v209_v40 }
 0x1a2   :  { %v184_v41 = vpop.f32.mrf.mxu3 }
 0x1a4   :  { %v203_v42 = vpop.f32.mrf.mxu0 }
 0x1b2   :  { %147 = vrot.lane.b32.xlu0 %v716_v3, %s657_s26 }
 0x1fb   :  { %v328_v43 = vpop.f32.mrf.mxu0 }
 0x1fc   :  { %v335_v44 = vsel %vm205_vm2, %v328_v43, -inf }
 0x1fd   :  { %336 = vmax.xlane.f32.xlu2 %v335_v44 }
 0x203   :  { %v330_v45 = vpop.f32.mrf.mxu0 }
 0x20f   :  { %v208_v46 = vpop.xlane.xlu1 %207 }
 0x210   :  { %v212_v47 = vsub.f32 %v182_v37, %v208_v46 }
 0x211   :  { %v211_v48 = vpop.xlane.xlu0 %210  ;;  %v299_v49 = vpop.f32.mrf.mxu3 }
 0x212   :  { %v214_v50 = vmul.f32 1.442695, %v212_v47  ;;  %v213_v51 = vsub.f32 %v201_v39, %v211_v48  ;;  %v332_v52 = vsel %vm205_vm2, %v299_v49, -inf }
 0x213   :  { %333 = vmax.xlane.f32.xlu2 %v332_v52 }
 0x214   :  { %538 = vpow2.f32 %v214_v50  ;;  %v216_v53 = vmul.f32 1.442695, %v213_v51  ;;  %v524_v50 = vld [vmem:[#allocation8 + $0x8] sm:$0xff]  ;;  %v523_v51 = vld [vmem:[#allocation8] sm:$0xff] }
 0x215   :  { %453 = vmatpush.bf16.msra.mxu3 %v524_v50 }
 0x216   :  { %540 = vpow2.f32 %v216_v53 }
 0x218   :  { %v159_v59 = vpop.f32.mrf.mxu2 }
 0x219   :  { %v301_v54 = vpop.f32.mrf.mxu3  ;;  %454 = vmatpush.bf16.msra.mxu3 %v523_v51 }
 0x21a   :  { %v539_v55 = vpop.eup %538 }
 0x21b   :  { %v218_v56 = vsel %vm205_vm2, %v539_v55, 0.0 }
 0x21c   :  { %v541_v57 = vpop.eup %540  ;;  %219 = vadd.xlane.f32.xlu2 %v218_v56 }
 0x21d   :  { %v221_v58 = vsel %vm205_vm2, %v541_v57, 0.0 }
 0x21e   :  { %222 = vadd.xlane.f32.xlu1 %v221_v58 }
 0x220   :  { %v161_v62 = vpop.f32.mrf.mxu2 }
 0x224   :  { %v148_v60 = vpop.permute.xlu0 %147 }
 0x225   :  { %v160_v61 = vadd.f32 %v159_v59, %v148_v60  ;;  %v162_v63 = vadd.f32 %v161_v62, %v148_v60 }
 0x227   :  { %v164_v0 = vpack.c.bf16 %v160_v61, %v160_v61  ;;  %v165_v1 = vpack.c.bf16 %v162_v63, %v162_v63 }
 0x229   :  { %v357_v2 = vunpack.c.l.b16 %v164_v0  ;;  %v235_v3 = vsel %vm233_vm3, %v164_v0, 0  ;;  %v254_v4 = vsel %vm233_vm3, %v165_v1, 0  ;;  %v381_v15 = vunpack.c.l.b16 %v165_v1 }
 0x22a   :  { %244 = vmatpush.bf16.msrb.mxu1 %v235_v3  ;;  %263 = vmatpush.bf16.msrb.mxu2 %v254_v4 }
 0x22b   :  { %v358_v5 = vpack.c.b16 %v357_v2, %v357_v2  ;;  %v382_v19 = vpack.c.b16 %v381_v15, %v381_v15 }
 0x22d   :  { %359 = vrot.lane.b32.xlu0 %v358_v5, %s662_s10 }
 0x270   :  { %v337_v6 = vpop.xlane.xlu2 %336 }
 0x271   :  { %v339_v7 = vsub.f32 %v328_v43, %v337_v6 }
 0x273   :  { %v342_v8 = vmul.f32 1.442695, %v339_v7 }
 0x275   :  { %542 = vpow2.f32 %v342_v8 }
 0x27b   :  { %v543_v9 = vpop.eup %542 }
 0x27c   :  { %v347_v10 = vsel %vm205_vm2, %v543_v9, 0.0 }
 0x27d   :  { %348 = vadd.xlane.f32.xlu1 %v347_v10 }
 0x286   :  { %v334_v11 = vpop.xlane.xlu2 %333 }
 0x287   :  { %v338_v12 = vsub.f32 %v299_v49, %v334_v11 }
 0x289   :  { %v340_v13 = vmul.f32 1.442695, %v338_v12 }
 0x28b   :  { %544 = vpow2.f32 %v340_v13 }
 0x28f   :  { %v220_v14 = vpop.xlane.xlu2 %219 }
 0x290   :  { %546 = vrcp.f32 %v220_v14 }
 0x291   :  { %v545_v16 = vpop.eup %544  ;;  %v223_v17 = vpop.xlane.xlu1 %222 }
 0x292   :  { %548 = vrcp.f32 %v223_v17  ;;  %v344_v18 = vsel %vm205_vm2, %v545_v16, 0.0 }
 0x293   :  { %345 = vadd.xlane.f32.xlu2 %v344_v18 }
 0x296   :  { %v547_v20 = vpop.eup %546  ;;  %383 = vrot.lane.b32.xlu1 %v382_v19, %s662_s10 }
 0x297   :  { %v226_v21 = vmul.f32 %v547_v20, %v539_v55  ;;  %v537_v55 = vld [vmem:[%s770_s4] ss:$0 sm:$0xff] }
 0x298   :  { %v549_v22 = vpop.eup %548 }
 0x299   :  { %v227_v23 = vmul.f32 %v549_v22, %v541_v57  ;;  %v228_v24 = vpack.c.bf16 %v226_v21, %v226_v21 }
 0x29b   :  { %500 = vmatmul.msk.bf16.vlgmr.msrb.gmra.mxu1 %vm205_vm2, %v228_v24  ;;  %v229_v25 = vpack.c.bf16 %v227_v23, %v227_v23 }
 0x29d   :  { %501 = vmatmul.msk.bf16.vlgmr.msrb.gmra.mxu2 %vm205_vm2, %v229_v25 }
 0x29f   :  { %v360_v26 = vpop.permute.xlu0 %359 }
 0x2a0   :  { %v365_v27 = vsel %vm233_vm3, %v360_v26, 0 }
 0x2a1   :  { %374 = vmatpush.bf16.msra.mxu1 %v365_v27 }
 0x2f0   :  { %v349_v28 = vpop.xlane.xlu1 %348 }
 0x2f1   :  { %550 = vrcp.f32 %v349_v28 }
 0x2f7   :  { %v551_v29 = vpop.eup %550 }
 0x2f8   :  { %v353_v31 = vmul.f32 %v551_v29, %v543_v9 }
 0x2fa   :  { %v355_v34 = vpack.c.bf16 %v353_v31, %v353_v31 }
 0x306   :  { %v346_v30 = vpop.xlane.xlu2 %345 }
 0x307   :  { %552 = vrcp.f32 %v346_v30 }
 0x308   :  { %v384_v32 = vpop.permute.xlu1 %383 }
 0x309   :  { %v389_v33 = vsel %vm233_vm3, %v384_v32, 0 }
 0x30a   :  { %398 = vmatpush.bf16.msra.mxu2 %v389_v33 }
 0x30d   :  { %v553_v35 = vpop.eup %552  ;;  %505 = vmatmul.msk.bf16.vlgmr.msra.gmra.mxu2 %vm205_vm2, %v355_v34 }
 0x30e   :  { %v352_v36 = vmul.f32 %v553_v35, %v545_v16 }
 0x310   :  { %v354_v37 = vpack.c.bf16 %v352_v36, %v352_v36 }
 0x312   :  { %504 = vmatmul.msk.bf16.vlgmr.msra.gmra.mxu1 %vm205_vm2, %v354_v37 }
 0x318   :  { %v246_v38 = vpop.f32.mrf.mxu1 }
 0x319   :  { %v269_v39 = vpack.c.bf16 %v246_v38, %v246_v38 }
 0x31b   :  { %272 = vst.msk [vmem:[#allocation2] sm:$0xf] %vm271_vm4, %v269_v39 }
 0x320   :  { %v248_v40 = vpop.f32.mrf.mxu1  ;;  %v265_v41 = vpop.f32.mrf.mxu2 }
 0x321   :  { %v270_v42 = vpack.c.bf16 %v265_v41, %v265_v41 }
 0x323   :  { %273 = vst.msk [vmem:[#allocation2 + $0x4] sm:$0xf] %vm271_vm4, %v270_v42 }
 0x328   :  { %v267_v43 = vpop.f32.mrf.mxu2 }
 0x38f   :  { %v376_v44 = vpop.f32.mrf.mxu1 }
 0x390   :  { %v404_v45 = vpack.c.bf16 %v376_v44, %v376_v44  ;;  %v400_v46 = vpop.f32.mrf.mxu2 }
 0x391   :  { %v405_v47 = vpack.c.bf16 %v400_v46, %v400_v46 }
 0x392   :  { %408 = vrot.lane.b32.xlu2 %v404_v45, %s663_s2 }
 0x393   :  { %410 = vrot.lane.b32.xlu0 %v405_v47, %s663_s2 }
 0x397   :  { %v378_v48 = vpop.f32.mrf.mxu1 }
 0x398   :  { %v402_v49 = vpop.f32.mrf.mxu2 }
 0x3ec   :  { %v409_v52 = vpop.permute.xlu2 %408 }
 0x3ed   :  { %415 = vst.msk [vmem:[#allocation2] sm:$0xf] %vm414_vm5, %v409_v52 }
 0x405   :  { %v411_v53 = vpop.permute.xlu0 %410 }
 0x406   :  { %416 = vst.msk [vmem:[#allocation2 + $0x4] sm:$0xf] %vm414_vm5, %v411_v53 }
 0x40d   :  { %v522_v54 = vld [vmem:[#allocation2] sm:$0xff] }
 0x40e   :  { %518 = vmatmul.msk.bf16.vlgmr.msra.gmra.mxu3 %vm96_vm0, %v522_v54 }
 0x491   :  { %v456_v56 = vpop.f32.mrf.mxu3 }
 0x492   :  { %v457_v57 = vadd.f32 %v537_v55, %v456_v56 }
 0x494   :  { %461 = vst.msk [vmem:[#allocation9] sm:$0xff] %vm96_vm0, %v457_v57 }
 0x499   :  { %v458_v58 = vpop.f32.mrf.mxu3 }
 0x49a   :  { %v459_v59 = vadd.f32 %v537_v55, %v458_v58 }
 0x49c   :  { %462 = vst.msk [vmem:[#allocation9 + $0x8] sm:$0xff] %vm96_vm0, %v459_v59 }
 0x49d   :  { %475 = dma.vmem_to_hbm [thread:$0]  %s468_s14, 256, %s470_s17, [#allocation5], %s665_s18, %s665_s18, %s666_s19  }
 0x49e   :  { %654 = dma.done.wait [#allocation5], 256  }
 0x49f   :  { %655 = vsyncadd [#allocation5], 4294967040 }
 0x4a0   :  { %480 = vsyncpa [#allocation4], 1 }
 0x4a1   :  { %481 = vsyncpa [#allocation7], 1 }
 0x4a2   :  { %482 = vsyncpa [#allocation5], 1 }

// kernel: tpu_custom_call.1
= control target key start
LH: loop header
LB: loop body
LE: loop exit
PB: predicated region body
PF: predicated region fallthrough
CT: control target
= control target key end

     0   :  { %10 = vsyncpa [#allocation4], 0  ;;  %s766_s0 = inlined_call_operand.hbm [shape: bf16[2,8,32], index: 0, kind: input, shape index: {}]   ;;  %s767_s1 = inlined_call_operand.hbm [shape: bf16[32,96], index: 1, kind: input, shape index: {}]   ;;  %s768_s2 = inlined_call_operand.vmem [shape: f32[1,96], index: 2, kind: input, shape index: {}]   ;;  %s769_s3 = inlined_call_operand.hbm [shape: bf16[32,32], index: 3, kind: input, shape index: {}]   ;;  %s770_s4 = inlined_call_operand.vmem [shape: f32[1,32], index: 4, kind: input, shape index: {}]   ;;  %s771_s5 = inlined_call_operand.hbm [shape: f32[2,8,32], index: 5, kind: output, shape index: {}]  }
   0x1   :  { %11 = vsyncpa [#allocation7], 0 }
   0x2   :  { %12 = vsyncpa [#allocation5], 0  ;;  %s30_s20 = sshll.u32 %s767_s1, 4  ;;  %s656_s21 = smov [#allocation6]   ;;  %s31_s20 = int_to_ptr.hbm [resolvable:$true] %s30_s20 }
   0x3   :  { %s32_s22 = sshll.u32 %s656_s21, 4  ;;  %s17_s25 = sshll.u32 %s766_s0, 4  ;;  %s33_s22 = int_to_ptr.vmem [resolvable:$true] %s32_s22  ;;  %s18_s25 = int_to_ptr.hbm [resolvable:$true] %s17_s25 }
   0x4   :  { %s657_s26 = smov 64   ;;  %s658_s27 = smov 4  }
   0x5   :  { %38 = dma.hbm_to_vmem [thread:$0]  %s31_s20, 256, %s33_s22, [#allocation7], %s657_s26, %s657_s26, %s658_s27  }
   0x6   :  { %s659_s28 = smov [#allocation3]   ;;  %s45_s1 = sshll.u32 %s769_s3, 4  ;;  %s46_s1 = int_to_ptr.hbm [resolvable:$true] %s45_s1 }
   0x7   :  { %s19_s29 = sshll.u32 %s659_s28, 4  ;;  %s660_s7 = smov [#allocation8]   ;;  %s20_s29 = int_to_ptr.vmem [resolvable:$true] %s19_s29 }
   0x8   :  { %25 = dma.hbm_to_vmem [thread:$0]  %s18_s25, 128, %s20_s29, [#allocation4], %s657_s26, %s657_s26, %s658_s27  }
   0x9   :  { %s47_s8 = sshll.u32 %s660_s7, 4  ;;  %s48_s8 = int_to_ptr.vmem [resolvable:$true] %s47_s8 }
   0xa   :  { %53 = dma.hbm_to_vmem [thread:$0]  %s46_s1, 256, %s48_s8, [#allocation7], %s657_s26, %s657_s26, %s658_s27  }
   0xb   :  { %650 = dma.done.wait [#allocation4], 128  }
   0xc   :  { %651 = vsyncadd [#allocation4], 4294967168 }
   0xd   :  { %652 = dma.done.wait [#allocation7], 512  }
   0xe   :  { %653 = vsyncadd [#allocation7], 4294966784  ;;  %v521_v0 = vld [vmem:[#allocation6 + $0x8] sm:$0xff]  ;;  %s661_s0 = smov 96   ;;  %v520_v1 = vld [vmem:[#allocation6] sm:$0xff]  ;;  %vm96_vm0 = vcmask 261120  }
   0xf   :  { %118 = vrot.lane.b32.xlu0 %v521_v0, %s661_s0  ;;  %106 = vmatpush.bf16.msra.mxu0 %v521_v0  ;;  %v519_v2 = vld [vmem:[#allocation3] sm:$0xff]  ;;  %v716_v3 = vld [vmem:[%s768_s2] ss:$0 sm:$0xff]  ;;  %s662_s10 = smov 112   ;;  %vm166_vm1 = vcmask 130048   ;;  %vm205_vm2 = vcmask 64512  }
  0x10   :  { %122 = vrot.lane.b32.xlu1 %v716_v3, %s661_s0  ;;  %vm233_vm3 = vcmask 1043456   ;;  %vm271_vm4 = vcmask 125952   ;;  %s663_s2 = smov 16   ;;  %vm414_vm5 = vcmask 257152   ;;  %s664_s13 = smov [#allocation9]  }
  0x11   :  { %s467_s14 = sshll.u32 %s664_s13, 4  ;;  %s469_s17 = sshll.u32 %s771_s5, 4  ;;  %s468_s14 = int_to_ptr.vmem [resolvable:$true] %s467_s14  ;;  %s470_s17 = int_to_ptr.hbm [resolvable:$true] %s469_s17 }
  0x12   :  { %s665_s18 = smov 128   ;;  %s666_s19 = smov 8  }
  0x13   :  { %107 = vmatpush.bf16.msra.mxu0 %v520_v1 }
  0x16   :  { %495 = vmatmul.msk.bf16.vlgmr.msra.gmra.mxu0 %vm96_vm0, %v519_v2 }
  0x17   :  { %116 = vrot.lane.b32.xlu0 %v520_v1, %s661_s0 }
  0x81   :  { %v119_v4 = vpop.permute.xlu0 %118 }
  0x82   :  { %131 = vmatpush.bf16.msra.mxu1 %v119_v4  ;;  %v123_v12 = vpop.permute.xlu1 %122 }
  0x89   :  { %v117_v5 = vpop.permute.xlu0 %116 }
  0x8a   :  { %132 = vmatpush.bf16.msra.mxu1 %v117_v5 }
  0x8d   :  { %496 = vmatmul.msk.bf16.vlgmr.msra.gmra.mxu1 %vm96_vm0, %v519_v2 }
  0x93   :  { %v109_v6 = vpop.f32.mrf.mxu0 }
  0x94   :  { %v110_v18 = vadd.f32 %v716_v3, %v109_v6 }
  0x96   :  { %v114_v22 = vpack.c.bf16 %v110_v18, %v110_v18 }
  0x98   :  { %v275_v27 = vunpack.c.l.b16 %v114_v22 }
  0x9a   :  { %v276_v28 = vpack.c.b16 %v275_v27, %v275_v27 }
  0x9b   :  { %v111_v7 = vpop.f32.mrf.mxu0 }
  0x9c   :  { %v112_v8 = vadd.f32 %v716_v3, %v111_v7 }
  0x9e   :  { %v115_v9 = vpack.c.bf16 %v112_v8, %v112_v8 }
  0xa0   :  { %v304_v10 = vunpack.c.l.b16 %v115_v9 }
  0xa2   :  { %v305_v11 = vpack.c.b16 %v304_v10, %v304_v10 }
  0xa4   :  { %306 = vrot.lane.b32.xlu0 %v305_v11, %s662_s10 }
 0x10a   :  { %v134_v13 = vpop.f32.mrf.mxu1 }
 0x10b   :  { %v135_v14 = vadd.f32 %v134_v13, %v123_v12 }
 0x10d   :  { %v139_v15 = vpack.c.bf16 %v135_v14, %v135_v14 }
 0x10f   :  { %v280_v16 = vunpack.c.l.b16 %v139_v15  ;;  %v171_v17 = vsel %vm166_vm1, %v139_v15, 0 }
 0x110   :  { %180 = vmatpush.bf16.xpose.msra.mxu3 %v171_v17 }
 0x111   :  { %v281_v19 = vpack.c.b16 %v280_v16, %v280_v16 }
 0x112   :  { %v136_v20 = vpop.f32.mrf.mxu1 }
 0x113   :  { %v137_v21 = vadd.f32 %v136_v20, %v123_v12  ;;  %282 = vrot.lane.b32.xlu1 %v281_v19, %s662_s10 }
 0x115   :  { %v140_v23 = vpack.c.bf16 %v137_v21, %v137_v21 }
 0x116   :  { %v307_v31 = vpop.permute.xlu0 %306 }
 0x117   :  { %498 = vmatmul.msk.bf16.vlgmr.msra.gmra.mxu3 %vm166_vm1, %v114_v22  ;;  %v190_v24 = vsel %vm166_vm1, %v140_v23, 0  ;;  %v309_v25 = vunpack.c.l.b16 %v140_v23 }
 0x118   :  { %199 = vmatpush.bf16.xpose.msrb.mxu0 %v190_v24 }
 0x119   :  { %v310_v26 = vpack.c.b16 %v309_v25, %v309_v25 }
 0x11b   :  { %311 = vrot.lane.b32.xlu2 %v310_v26, %s662_s10  ;;  %143 = vrot.lane.b32.xlu1 %v521_v0, %s657_s26 }
 0x11f   :  { %499 = vmatmul.msk.bf16.vlgmr.msrb.gmra.mxu0 %vm166_vm1, %v115_v9 }
 0x123   :  { %277 = vrot.lane.b32.xlu2 %v276_v28, %s662_s10 }
 0x12b   :  { %141 = vrot.lane.b32.xlu2 %v520_v1, %s657_s26 }
 0x175   :  { %v312_v29 = vpop.permute.xlu2 %311 }
 0x176   :  { %v317_v30 = vsel %vm166_vm1, %v312_v29, 0 }
 0x177   :  { %326 = vmatpush.bf16.xpose.msra.mxu0 %v317_v30 }
 0x17d   :  { %v278_v34 = vpop.permute.xlu2 %277 }
 0x17e   :  { %503 = vmatmul.msk.bf16.vlgmr.msra.gmra.mxu0 %vm166_vm1, %v307_v31 }
 0x185   :  { %v283_v32 = vpop.permute.xlu1 %282  ;;  %v142_v36 = vpop.permute.xlu2 %141 }
 0x186   :  { %v288_v33 = vsel %vm166_vm1, %v283_v32, 0 }
 0x187   :  { %297 = vmatpush.bf16.xpose.msrb.mxu3 %v288_v33 }
 0x18d   :  { %v144_v35 = vpop.permute.xlu1 %143 }
 0x18e   :  { %502 = vmatmul.msk.bf16.vlgmr.msrb.gmra.mxu3 %vm166_vm1, %v278_v34  ;;  %156 = vmatpush.bf16.msra.mxu2 %v144_v35 }
 0x192   :  { %157 = vmatpush.bf16.msra.mxu2 %v142_v36 }
 0x195   :  { %497 = vmatmul.msk.bf16.vlgmr.msra.gmra.mxu2 %vm96_vm0, %v519_v2 }
 0x19a   :  { %v182_v37 = vpop.f32.mrf.mxu3 }
 0x19b   :  { %v206_v38 = vsel %vm205_vm2, %v182_v37, -inf }
 0x19c   :  { %v201_v39 = vpop.f32.mrf.mxu0  ;;  %207 = vmax.xlane.f32.xlu1 %v206_v38 }
 0x19d   :  { %v209_v40 = vsel %vm205_vm2, %v201_v39, -inf }
 0x19e   :  { %210 = vmax.xlane.f32.xlu0 %v209_v40 }
 0x1a2   :  { %v184_v41 = vpop.f32.mrf.mxu3 }
 0x1a4   :  { %v203_v42 = vpop.f32.mrf.mxu0 }
 0x1b2   :  { %147 = vrot.lane.b32.xlu0 %v716_v3, %s657_s26 }
 0x1fb   :  { %v328_v43 = vpop.f32.mrf.mxu0 }
 0x1fc   :  { %v335_v44 = vsel %vm205_vm2, %v328_v43, -inf }
 0x1fd   :  { %336 = vmax.xlane.f32.xlu2 %v335_v44 }
 0x203   :  { %v330_v45 = vpop.f32.mrf.mxu0 }
 0x20f   :  { %v208_v46 = vpop.xlane.xlu1 %207 }
 0x210   :  { %v212_v47 = vsub.f32 %v182_v37, %v208_v46 }
 0x211   :  { %v211_v48 = vpop.xlane.xlu0 %210  ;;  %v299_v49 = vpop.f32.mrf.mxu3 }
 0x212   :  { %v214_v50 = vmul.f32 1.442695, %v212_v47  ;;  %v213_v51 = vsub.f32 %v201_v39, %v211_v48  ;;  %v332_v52 = vsel %vm205_vm2, %v299_v49, -inf }
 0x213   :  { %333 = vmax.xlane.f32.xlu2 %v332_v52 }
 0x214   :  { %538 = vpow2.f32 %v214_v50  ;;  %v216_v53 = vmul.f32 1.442695, %v213_v51  ;;  %v524_v50 = vld [vmem:[#allocation8 + $0x8] sm:$0xff]  ;;  %v523_v51 = vld [vmem:[#allocation8] sm:$0xff] }
 0x215   :  { %453 = vmatpush.bf16.msra.mxu3 %v524_v50 }
 0x216   :  { %540 = vpow2.f32 %v216_v53 }
 0x218   :  { %v159_v59 = vpop.f32.mrf.mxu2 }
 0x219   :  { %v301_v54 = vpop.f32.mrf.mxu3  ;;  %454 = vmatpush.bf16.msra.mxu3 %v523_v51 }
 0x21a   :  { %v539_v55 = vpop.eup %538 }
 0x21b   :  { %v218_v56 = vsel %vm205_vm2, %v539_v55, 0.0 }
 0x21c   :  { %v541_v57 = vpop.eup %540  ;;  %219 = vadd.xlane.f32.xlu2 %v218_v56 }
 0x21d   :  { %v221_v58 = vsel %vm205_vm2, %v541_v57, 0.0 }
 0x21e   :  { %222 = vadd.xlane.f32.xlu1 %v221_v58 }
 0x220   :  { %v161_v62 = vpop.f32.mrf.mxu2 }
 0x224   :  { %v148_v60 = vpop.permute.xlu0 %147 }
 0x225   :  { %v160_v61 = vadd.f32 %v159_v59, %v148_v60  ;;  %v162_v63 = vadd.f32 %v161_v62, %v148_v60 }
 0x227   :  { %v164_v0 = vpack.c.bf16 %v160_v61, %v160_v61  ;;  %v165_v1 = vpack.c.bf16 %v162_v63, %v162_v63 }
 0x229   :  { %v357_v2 = vunpack.c.l.b16 %v164_v0  ;;  %v235_v3 = vsel %vm233_vm3, %v164_v0, 0  ;;  %v254_v4 = vsel %vm233_vm3, %v165_v1, 0  ;;  %v381_v15 = vunpack.c.l.b16 %v165_v1 }
 0x22a   :  { %244 = vmatpush.bf16.msrb.mxu1 %v235_v3  ;;  %263 = vmatpush.bf16.msrb.mxu2 %v254_v4 }
 0x22b   :  { %v358_v5 = vpack.c.b16 %v357_v2, %v357_v2  ;;  %v382_v19 = vpack.c.b16 %v381_v15, %v381_v15 }
 0x22d   :  { %359 = vrot.lane.b32.xlu0 %v358_v5, %s662_s10 }
 0x270   :  { %v337_v6 = vpop.xlane.xlu2 %336 }
 0x271   :  { %v339_v7 = vsub.f32 %v328_v43, %v337_v6 }
 0x273   :  { %v342_v8 = vmul.f32 1.442695, %v339_v7 }
 0x275   :  { %542 = vpow2.f32 %v342_v8 }
 0x27b   :  { %v543_v9 = vpop.eup %542 }
 0x27c   :  { %v347_v10 = vsel %vm205_vm2, %v543_v9, 0.0 }
 0x27d   :  { %348 = vadd.xlane.f32.xlu1 %v347_v10 }
 0x286   :  { %v334_v11 = vpop.xlane.xlu2 %333 }
 0x287   :  { %v338_v12 = vsub.f32 %v299_v49, %v334_v11 }
 0x289   :  { %v340_v13 = vmul.f32 1.442695, %v338_v12 }
 0x28b   :  { %544 = vpow2.f32 %v340_v13 }
 0x28f   :  { %v220_v14 = vpop.xlane.xlu2 %219 }
 0x290   :  { %546 = vrcp.f32 %v220_v14 }
 0x291   :  { %v545_v16 = vpop.eup %544  ;;  %v223_v17 = vpop.xlane.xlu1 %222 }
 0x292   :  { %548 = vrcp.f32 %v223_v17  ;;  %v344_v18 = vsel %vm205_vm2, %v545_v16, 0.0 }
 0x293   :  { %345 = vadd.xlane.f32.xlu2 %v344_v18 }
 0x296   :  { %v547_v20 = vpop.eup %546  ;;  %383 = vrot.lane.b32.xlu1 %v382_v19, %s662_s10 }
 0x297   :  { %v226_v21 = vmul.f32 %v547_v20, %v539_v55  ;;  %v537_v55 = vld [vmem:[%s770_s4] ss:$0 sm:$0xff] }
 0x298   :  { %v549_v22 = vpop.eup %548 }
 0x299   :  { %v227_v23 = vmul.f32 %v549_v22, %v541_v57  ;;  %v228_v24 = vpack.c.bf16 %v226_v21, %v226_v21 }
 0x29b   :  { %500 = vmatmul.msk.bf16.vlgmr.msrb.gmra.mxu1 %vm205_vm2, %v228_v24  ;;  %v229_v25 = vpack.c.bf16 %v227_v23, %v227_v23 }
 0x29d   :  { %501 = vmatmul.msk.bf16.vlgmr.msrb.gmra.mxu2 %vm205_vm2, %v229_v25 }
 0x29f   :  { %v360_v26 = vpop.permute.xlu0 %359 }
 0x2a0   :  { %v365_v27 = vsel %vm233_vm3, %v360_v26, 0 }
 0x2a1   :  { %374 = vmatpush.bf16.msra.mxu1 %v365_v27 }
 0x2f0   :  { %v349_v28 = vpop.xlane.xlu1 %348 }
 0x2f1   :  { %550 = vrcp.f32 %v349_v28 }
 0x2f7   :  { %v551_v29 = vpop.eup %550 }
 0x2f8   :  { %v353_v31 = vmul.f32 %v551_v29, %v543_v9 }
 0x2fa   :  { %v355_v34 = vpack.c.bf16 %v353_v31, %v353_v31 }
 0x306   :  { %v346_v30 = vpop.xlane.xlu2 %345 }
 0x307   :  { %552 = vrcp.f32 %v346_v30 }
 0x308   :  { %v384_v32 = vpop.permute.xlu1 %383 }
 0x309   :  { %v389_v33 = vsel %vm233_vm3, %v384_v32, 0 }
 0x30a   :  { %398 = vmatpush.bf16.msra.mxu2 %v389_v33 }
 0x30d   :  { %v553_v35 = vpop.eup %552  ;;  %505 = vmatmul.msk.bf16.vlgmr.msra.gmra.mxu2 %vm205_vm2, %v355_v34 }
 0x30e   :  { %v352_v36 = vmul.f32 %v553_v35, %v545_v16 }
 0x310   :  { %v354_v37 = vpack.c.bf16 %v352_v36, %v352_v36 }
 0x312   :  { %504 = vmatmul.msk.bf16.vlgmr.msra.gmra.mxu1 %vm205_vm2, %v354_v37 }
 0x318   :  { %v246_v38 = vpop.f32.mrf.mxu1 }
 0x319   :  { %v269_v39 = vpack.c.bf16 %v246_v38, %v246_v38 }
 0x31b   :  { %272 = vst.msk [vmem:[#allocation2] sm:$0xf] %vm271_vm4, %v269_v39 }
 0x320   :  { %v248_v40 = vpop.f32.mrf.mxu1  ;;  %v265_v41 = vpop.f32.mrf.mxu2 }
 0x321   :  { %v270_v42 = vpack.c.bf16 %v265_v41, %v265_v41 }
 0x323   :  { %273 = vst.msk [vmem:[#allocation2 + $0x4] sm:$0xf] %vm271_vm4, %v270_v42 }
 0x328   :  { %v267_v43 = vpop.f32.mrf.mxu2 }
 0x38f   :  { %v376_v44 = vpop.f32.mrf.mxu1 }
 0x390   :  { %v404_v45 = vpack.c.bf16 %v376_v44, %v376_v44  ;;  %v400_v46 = vpop.f32.mrf.mxu2 }
 0x391   :  { %v405_v47 = vpack.c.bf16 %v400_v46, %v400_v46 }
 0x392   :  { %408 = vrot.lane.b32.xlu2 %v404_v45, %s663_s2 }
 0x393   :  { %410 = vrot.lane.b32.xlu0 %v405_v47, %s663_s2 }
 0x397   :  { %v378_v48 = vpop.f32.mrf.mxu1 }
 0x398   :  { %v402_v49 = vpop.f32.mrf.mxu2 }
 0x3ec   :  { %v409_v52 = vpop.permute.xlu2 %408 }
 0x3ed   :  { %415 = vst.msk [vmem:[#allocation2] sm:$0xf] %vm414_vm5, %v409_v52 }
 0x405   :  { %v411_v53 = vpop.permute.xlu0 %410 }
 0x406   :  { %416 = vst.msk [vmem:[#allocation2 + $0x4] sm:$0xf] %vm414_vm5, %v411_v53 }
 0x40d   :  { %v522_v54 = vld [vmem:[#allocation2] sm:$0xff] }
 0x40e   :  { %518 = vmatmul.msk.bf16.vlgmr.msra.gmra.mxu3 %vm96_vm0, %v522_v54 }
 0x491   :  { %v456_v56 = vpop.f32.mrf.mxu3 }
 0x492   :  { %v457_v57 = vadd.f32 %v537_v55, %v456_v56 }
 0x494   :  { %461 = vst.msk [vmem:[#allocation9] sm:$0xff] %vm96_vm0, %v457_v57 }
 0x499   :  { %v458_v58 = vpop.f32.mrf.mxu3 }
 0x49a   :  { %v459_v59 = vadd.f32 %v537_v55, %v458_v58 }
 0x49c   :  { %462 = vst.msk [vmem:[#allocation9 + $0x8] sm:$0xff] %vm96_vm0, %v459_v59 }
 0x49d   :  { %475 = dma.vmem_to_hbm [thread:$0]  %s468_s14, 256, %s470_s17, [#allocation5], %s665_s18, %s665_s18, %s666_s19  }
 0x49e   :  { %654 = dma.done.wait [#allocation5], 256  }
 0x49f   :  { %655 = vsyncadd [#allocation5], 4294967040 }
 0x4a0   :  { %480 = vsyncpa [#allocation4], 1 }
 0x4a1   :  { %481 = vsyncpa [#allocation7], 1 }
 0x4a2   :  { %482 = vsyncpa [#allocation5], 1 }

</bundles_post_ra>
